<compile_context>
chip_gen: v7x
topology: tpu7x:2x2x1
jax: 0.10.0
libtpu: 0.0.40
codegen_flags: <defaults>
</compile_context>

<pallas_src>
import functools

import jax
import jax.numpy as jnp
from jax.experimental import pallas as pl
from jax.experimental.pallas import tpu as pltpu

BN_EPS = 1e-5


# ---------------------------------------------------------------------------
# pass 1: batch statistics of h = x @ W1 + b1   (sum and sum-of-squares per feature)
# ---------------------------------------------------------------------------
def _stats_kernel(x_ref, w1_ref, b1_ref, sum_ref, sumsq_ref, *, tile_n, n_valid, needs_mask):
    i = pl.program_id(0)
    h = jnp.dot(x_ref[...].astype(jnp.bfloat16), w1_ref[...],
                preferred_element_type=jnp.float32) + b1_ref[...]
    if needs_mask:
        # Zero out contributions of padded rows so BN statistics stay exact.
        row = jax.lax.broadcasted_iota(jnp.int32, (tile_n, 1), 0) + i * tile_n
        h = jnp.where(row < n_valid, h, 0.0)
    s = jnp.sum(h, axis=0, keepdims=True)
    ss = jnp.sum(h * h, axis=0, keepdims=True)

    @pl.when(i == 0)
    def _init():
        sum_ref[...] = s
        sumsq_ref[...] = ss

    @pl.when(i > 0)
    def _acc():
        sum_ref[...] = sum_ref[...] + s
        sumsq_ref[...] = sumsq_ref[...] + ss


# ---------------------------------------------------------------------------
# pass 2: recompute h, fused BN (scale/shift) + ReLU, plain last Linear
# ---------------------------------------------------------------------------
def _head_kernel(x_ref, w1_ref, b1_ref, sum_ref, sumsq_ref, gamma_ref, beta_ref,
                 w2_ref, b2_ref, o_ref, *, inv_n):
    h = jnp.dot(x_ref[...].astype(jnp.bfloat16), w1_ref[...],
                preferred_element_type=jnp.float32) + b1_ref[...]
    mean = sum_ref[...] * inv_n
    var = jnp.maximum(sumsq_ref[...] * inv_n - mean * mean, 0.0)      # biased variance
    scale = gamma_ref[...] * jax.lax.rsqrt(var + BN_EPS)              # rsqrt -> EUP (free slot)
    shift = beta_ref[...] - mean * scale
    a = jnp.maximum(h * scale + shift, 0.0)                           # BN + ReLU fused, f32 VPU
    out = jnp.dot(a.astype(jnp.bfloat16), w2_ref[...],
                  preferred_element_type=jnp.float32) + b2_ref[...]
    o_ref[...] = out.astype(o_ref.dtype)                              # lane-dense (tile_n, 128k) store


# ---------------------------------------------------------------------------
# wrapper: tiling, padding, VMEM budgeting
# ---------------------------------------------------------------------------
def _vmem_bytes(tile_n, dim_in, dim_inner, dim_out_pad):
    b = 2 * tile_n * dim_in * 4                         # x tile, double-buffered, f32
    b += 2 * tile_n * dim_out_pad * 4                   # out tile, double-buffered, f32
    b += 2 * (dim_in * dim_inner * 2                    # w1 (bf16)
              + dim_inner * dim_out_pad * 2             # w2 padded (bf16)
              + 6 * dim_inner * 4 + dim_out_pad * 4)    # b1/gamma/beta/sum/sumsq/b2
    b += 2 * tile_n * dim_inner * 4                     # h / normalized f32 temporaries
    b += tile_n * (dim_in + dim_inner) * 2              # bf16 MXU operand copies
    return b


def _choose_tile_n(n, dim_in, dim_inner, dim_out_pad, budget_bytes=20 << 20):
    if n <= 1024 and _vmem_bytes(n, dim_in, dim_inner, dim_out_pad) <= budget_bytes:
        return n                                        # single block covers the whole batch
    for t in (1024, 512, 256, 128, 64, 32, 16, 8):
        if t < n and _vmem_bytes(t, dim_in, dim_inner, dim_out_pad) <= budget_bytes:
            return t
    return 8


def prediction_head(x, w1, b1, gamma, beta, w2, b2, *, tile_n=None):
    """Pallas forward of PredictionHeadModule.layers applied to batch.x.

    x:     (N, dim_in) f32
    w1:    (dim_in, dim_inner)   (transposed vs. PyTorch's (out, in))
    b1, gamma, beta: (1, dim_inner)
    w2:    (dim_inner, dim_out)
    b2:    (1, dim_out)
    returns (N, dim_out) f32
    """
    N, dim_in = x.shape
    dim_inner = w1.shape[1]
    dim_out = w2.shape[1]

    # Lane-dense output: pad the last layer to a multiple of 128 output columns.
    dim_out_pad = ((dim_out + 127) // 128) * 128
    w2p = jnp.zeros((dim_inner, dim_out_pad), jnp.bfloat16).at[:, :dim_out].set(
        w2.astype(jnp.bfloat16))
    b2p = jnp.zeros((1, dim_out_pad), jnp.float32).at[:, :dim_out].set(
        b2.astype(jnp.float32))
    w1b = w1.astype(jnp.bfloat16)
    b1f = b1.astype(jnp.float32)
    gammaf = gamma.astype(jnp.float32)
    betaf = beta.astype(jnp.float32)

    if tile_n is None:
        tile_n = _choose_tile_n(N, dim_in, dim_inner, dim_out_pad)
    if tile_n >= N:
        tile_n = N
        n_pad = N
    else:
        tile_n = max(8, (tile_n // 8) * 8)
        n_pad = ((N + tile_n - 1) // tile_n) * tile_n
    grid = (n_pad // tile_n,)
    needs_mask = n_pad != N

    x_p = x.astype(jnp.float32)
    if n_pad != N:
        x_p = jnp.zeros((n_pad, dim_in), jnp.float32).at[:N].set(x_p)

    vmem_limit = int(min(max(2 * _vmem_bytes(tile_n, dim_in, dim_inner, dim_out_pad),
                             16 << 20), 48 << 20))

    x_spec = pl.BlockSpec((tile_n, dim_in), lambda i: (i, 0))
    const = lambda shape: pl.BlockSpec(shape, lambda i: (0, 0))

    # ---- pass 1: per-feature batch sum / sum-of-squares of h (reduction axis -> "arbitrary")
    sum_h, sumsq_h = pl.pallas_call(
        functools.partial(_stats_kernel, tile_n=tile_n, n_valid=N, needs_mask=needs_mask),
        out_shape=(jax.ShapeDtypeStruct((1, dim_inner), jnp.float32),
                   jax.ShapeDtypeStruct((1, dim_inner), jnp.float32)),
        grid=grid,
        in_specs=[x_spec, const((dim_in, dim_inner)), const((1, dim_inner))],
        out_specs=(const((1, dim_inner)), const((1, dim_inner))),
        compiler_params=pltpu.CompilerParams(
            dimension_semantics=("arbitrary",), vmem_limit_bytes=vmem_limit),
    )(x_p, w1b, b1f)

    # ---- pass 2: normalize + ReLU + plain last Linear (row tiles independent -> "parallel")
    out_pad = pl.pallas_call(
        functools.partial(_head_kernel, inv_n=float(1.0 / N)),
        out_shape=jax.ShapeDtypeStruct((n_pad, dim_out_pad), jnp.float32),
        grid=grid,
        in_specs=[x_spec,
                  const((dim_in, dim_inner)), const((1, dim_inner)),
                  const((1, dim_inner)), const((1, dim_inner)),
                  const((1, dim_inner)), const((1, dim_inner)),
                  const((dim_inner, dim_out_pad)), const((1, dim_out_pad))],
        out_specs=pl.BlockSpec((tile_n, dim_out_pad), lambda i: (i, 0)),
        compiler_params=pltpu.CompilerParams(
            dimension_semantics=("parallel",), vmem_limit_bytes=vmem_limit),
    )(x_p, w1b, b1f, sum_h, sumsq_h, gammaf, betaf, w2p, b2p)

    return out_pad[:N, :dim_out]


# ---------------------------------------------------------------------------
# references + test
# ---------------------------------------------------------------------------
def _reference_f32(x, w1, b1, gamma, beta, w2, b2):
    h = x @ w1 + b1
    mean = jnp.mean(h, axis=0, keepdims=True)
    var = jnp.mean((h - mean) ** 2, axis=0, keepdims=True)
    hn = (h - mean) * jax.lax.rsqrt(var + BN_EPS) * gamma + beta
    return jnp.maximum(hn, 0.0) @ w2 + b2


def _reference_bf16(x, w1, b1, gamma, beta, w2, b2):
    # Mirrors the kernel's bf16-MXU / f32-accumulate arithmetic exactly.
    h = jnp.dot(x.astype(jnp.bfloat16), w1.astype(jnp.bfloat16),
                preferred_element_type=jnp.float32) + b1
    n = x.shape[0]
    mean = jnp.sum(h, axis=0, keepdims=True) / n
    var = jnp.maximum(jnp.sum(h * h, axis=0, keepdims=True) / n - mean * mean, 0.0)
    scale = gamma * jax.lax.rsqrt(var + BN_EPS)
    shift = beta - mean * scale
    a = jnp.maximum(h * scale + shift, 0.0)
    return jnp.dot(a.astype(jnp.bfloat16), w2.astype(jnp.bfloat16),
                   preferred_element_type=jnp.float32) + b2


if __name__ == "__main__":
    dim_in, dim_inner, dim_out = 32, 128, 16

    key = jax.random.PRNGKey(0)
    kx, kw1, kb1, kw2, kb2 = jax.random.split(key, 5)

    w1 = jax.random.normal(kw1, (dim_in, dim_inner), dtype=jnp.float32) * 0.1
    b1 = jax.random.normal(kb1, (1, dim_inner), dtype=jnp.float32) * 0.01
    gamma = jnp.ones((1, dim_inner), dtype=jnp.float32)    # BatchNorm1d weight init
    beta = jnp.zeros((1, dim_inner), dtype=jnp.float32)    # BatchNorm1d bias init
    w2 = jax.random.normal(kw2, (dim_inner, dim_out), dtype=jnp.float32) * 0.1
    b2 = jax.random.normal(kb2, (1, dim_out), dtype=jnp.float32) * 0.01

    # Case 1: small batch, single tile.
    N1 = 8
    x1 = jax.random.normal(kx, (N1, dim_in), dtype=jnp.float32)
    out1 = jax.block_until_ready(prediction_head(x1, w1, b1, gamma, beta, w2, b2))
    assert out1.shape == (N1, dim_out)
    assert jnp.allclose(out1, _reference_bf16(x1, w1, b1, gamma, beta, w2, b2),
                        atol=2e-3, rtol=2e-3), "mismatch vs bf16-matmul reference (case 1)"
    assert jnp.allclose(out1, _reference_f32(x1, w1, b1, gamma, beta, w2, b2),
                        atol=1e-1, rtol=1e-1), "mismatch vs f32 reference (case 1)"

    # Case 2: N not a multiple of the tile -> exercises grid, row padding, and BN-stat masking.
    N2 = 20
    x2 = jax.random.normal(jax.random.PRNGKey(1), (N2, dim_in), dtype=jnp.float32)
    out2 = jax.block_until_ready(prediction_head(x2, w1, b1, gamma, beta, w2, b2, tile_n=8))
    assert out2.shape == (N2, dim_out)
    assert jnp.allclose(out2, _reference_bf16(x2, w1, b1, gamma, beta, w2, b2),
                        atol=2e-3, rtol=2e-3), "mismatch vs bf16-matmul reference (case 2)"
    assert jnp.allclose(out2, _reference_f32(x2, w1, b1, gamma, beta, w2, b2),
                        atol=1e-1, rtol=1e-1), "mismatch vs f32 reference (case 2)"

    # TODO(synk): dropout (p=0.0 default in PyG MLP) is a no-op and BatchNorm running-stat
    # updates (module-state side effects) are not modeled.
    print("KERNEL_OK")
</pallas_src>

<mosaic_0001>
module attributes {stable_mosaic.version = 11 : i64} {
  func.func @_stats_kernel(%arg0: i32, %arg1: memref<8x32xf32, #tpu.memory_space<vmem>>, %arg2: memref<32x128xbf16, #tpu.memory_space<vmem>>, %arg3: memref<1x128xf32, #tpu.memory_space<vmem>>, %arg4: memref<1x128xf32, #tpu.memory_space<vmem>>, %arg5: memref<1x128xf32, #tpu.memory_space<vmem>>) attributes {dimension_semantics = [#tpu.dimension_semantics<arbitrary>], iteration_bounds = array<i64: 1>, scalar_prefetch = 0 : i64, scratch_operands = 0 : i64, tpu.core_type = #tpu.core_type<tc>, window_params = [{transform_indices = @transform_0, window_bounds = array<i64: 8, 32>}, {pipeline_mode = #tpu.pipeline_mode<synchronous>, transform_indices = @transform_1, window_bounds = array<i64: 32, 128>}, {pipeline_mode = #tpu.pipeline_mode<synchronous>, transform_indices = @transform_2, window_bounds = array<i64: 1, 128>}, {pipeline_mode = #tpu.pipeline_mode<synchronous>, transform_indices = @transform_3, window_bounds = array<i64: 1, 128>}, {pipeline_mode = #tpu.pipeline_mode<synchronous>, transform_indices = @transform_4, window_bounds = array<i64: 1, 128>}]} {
    %c0 = arith.constant 0 : index
    %c0_0 = arith.constant 0 : index
    %0 = vector.load %arg1[%c0, %c0_0] : memref<8x32xf32, #tpu.memory_space<vmem>>, vector<8x32xf32>
    %1 = arith.truncf %0 : vector<8x32xf32> to vector<8x32xbf16>
    %c0_1 = arith.constant 0 : index
    %c0_2 = arith.constant 0 : index
    %2 = vector.load %arg2[%c0_1, %c0_2] : memref<32x128xbf16, #tpu.memory_space<vmem>>, vector<32x128xbf16>
    %cst = arith.constant dense<0.000000e+00> : vector<8x128xf32>
    %3 = tpu.matmul %1, %2, %cst {dimension_numbers = #tpu.dot_dimension_numbers<[1], [0], [0], [1], [0, 0, 1, 1], [], []>} : vector<8x32xbf16>, vector<32x128xbf16>, vector<8x128xf32> -> vector<8x128xf32>
    %c0_3 = arith.constant 0 : index
    %c0_4 = arith.constant 0 : index
    %4 = vector.load %arg3[%c0_3, %c0_4] : memref<1x128xf32, #tpu.memory_space<vmem>>, vector<1x128xf32>
    %5 = vector.broadcast %4 : vector<1x128xf32> to vector<8x128xf32>
    %6 = arith.addf %3, %5 : vector<8x128xf32>
    %cst_5 = arith.constant dense<0.000000e+00> : vector<128xf32>
    %7 = vector.multi_reduction <add>, %6, %cst_5 [0] : vector<8x128xf32> to vector<128xf32>
    %8 = vector.shape_cast %7 : vector<128xf32> to vector<1x128xf32>
    %9 = arith.mulf %6, %6 : vector<8x128xf32>
    %cst_6 = arith.constant dense<0.000000e+00> : vector<128xf32>
    %10 = vector.multi_reduction <add>, %9, %cst_6 [0] : vector<8x128xf32> to vector<128xf32>
    %11 = vector.shape_cast %10 : vector<128xf32> to vector<1x128xf32>
    %c0_i32 = arith.constant 0 : i32
    %12 = arith.cmpi eq, %arg0, %c0_i32 : i32
    %13 = arith.extui %12 : i1 to i32
    %c0_i32_7 = arith.constant 0 : i32
    %14 = arith.cmpi ne, %13, %c0_i32_7 : i32
    scf.if %14 {
      %c0_10 = arith.constant 0 : index
      %c0_11 = arith.constant 0 : index
      %18 = vector.load %arg4[%c0_10, %c0_11] : memref<1x128xf32, #tpu.memory_space<vmem>>, vector<1x128xf32>
      tpu.vector_store %arg4[%c0_10, %c0_11], %8 {strides = array<i32>} : memref<1x128xf32, #tpu.memory_space<vmem>>, vector<1x128xf32>,
      %c0_12 = arith.constant 0 : index
      %c0_13 = arith.constant 0 : index
      %19 = vector.load %arg5[%c0_12, %c0_13] : memref<1x128xf32, #tpu.memory_space<vmem>>, vector<1x128xf32>
      tpu.vector_store %arg5[%c0_12, %c0_13], %11 {strides = array<i32>} : memref<1x128xf32, #tpu.memory_space<vmem>>, vector<1x128xf32>,
    } else {
    }
    %c0_i32_8 = arith.constant 0 : i32
    %15 = arith.cmpi sgt, %arg0, %c0_i32_8 : i32
    %16 = arith.extui %15 : i1 to i32
    %c0_i32_9 = arith.constant 0 : i32
    %17 = arith.cmpi ne, %16, %c0_i32_9 : i32
    scf.if %17 {
      %c0_10 = arith.constant 0 : index
      %c0_11 = arith.constant 0 : index
      %18 = vector.load %arg4[%c0_10, %c0_11] : memref<1x128xf32, #tpu.memory_space<vmem>>, vector<1x128xf32>
      %19 = arith.addf %18, %8 : vector<1x128xf32>
      %c0_12 = arith.constant 0 : index
      %c0_13 = arith.constant 0 : index
      %20 = vector.load %arg4[%c0_12, %c0_13] : memref<1x128xf32, #tpu.memory_space<vmem>>, vector<1x128xf32>
      tpu.vector_store %arg4[%c0_12, %c0_13], %19 {strides = array<i32>} : memref<1x128xf32, #tpu.memory_space<vmem>>, vector<1x128xf32>,
      %c0_14 = arith.constant 0 : index
      %c0_15 = arith.constant 0 : index
      %21 = vector.load %arg5[%c0_14, %c0_15] : memref<1x128xf32, #tpu.memory_space<vmem>>, vector<1x128xf32>
      %22 = arith.addf %21, %11 : vector<1x128xf32>
      %c0_16 = arith.constant 0 : index
      %c0_17 = arith.constant 0 : index
      %23 = vector.load %arg5[%c0_16, %c0_17] : memref<1x128xf32, #tpu.memory_space<vmem>>, vector<1x128xf32>
      tpu.vector_store %arg5[%c0_16, %c0_17], %22 {strides = array<i32>} : memref<1x128xf32, #tpu.memory_space<vmem>>, vector<1x128xf32>,
    } else {
    }
    return
  }
  func.func @transform_0(%arg0: i32) -> (i32, i32) {
    %c0_i32 = arith.constant 0 : i32
    %c0_i32_0 = arith.constant 0 : i32
    return %arg0, %c0_i32 : i32, i32
  }
  func.func @transform_1(%arg0: i32) -> (i32, i32) {
    %c0_i32 = arith.constant 0 : i32
    %c0_i32_0 = arith.constant 0 : i32
    %c0_i32_1 = arith.constant 0 : i32
    return %c0_i32, %c0_i32_0 : i32, i32
  }
  func.func @transform_2(%arg0: i32) -> (i32, i32) {
    %c0_i32 = arith.constant 0 : i32
    %c0_i32_0 = arith.constant 0 : i32
    %c0_i32_1 = arith.constant 0 : i32
    return %c0_i32, %c0_i32_0 : i32, i32
  }
  func.func @transform_3(%arg0: i32) -> (i32, i32) {
    %c0_i32 = arith.constant 0 : i32
    %c0_i32_0 = arith.constant 0 : i32
    %c0_i32_1 = arith.constant 0 : i32
    return %c0_i32, %c0_i32_0 : i32, i32
  }
  func.func @transform_4(%arg0: i32) -> (i32, i32) {
    %c0_i32 = arith.constant 0 : i32
    %c0_i32_0 = arith.constant 0 : i32
    %c0_i32_1 = arith.constant 0 : i32
    return %c0_i32, %c0_i32_0 : i32, i32
  }
}

</mosaic_0001>

<bundles_post_ra>
// kernel: tpu_custom_call.1
= control target key start
LH: loop header
LB: loop body
LE: loop exit
PB: predicated region body
PF: predicated region fallthrough
CT: control target
= control target key end

     0   :  { %10 = vsyncpa [#allocation3], 0  ;;  %s393_s0 = inlined_call_operand.hbm [shape: f32[8,32], index: 0, kind: input, shape index: {}]   ;;  %s394_s1 = inlined_call_operand.hbm [shape: bf16[32,128], index: 1, kind: input, shape index: {}]   ;;  %s395_s2 = inlined_call_operand.vmem [shape: f32[1,128], index: 2, kind: input, shape index: {}]   ;;  %s396_s3 = inlined_call_operand.hbm [shape: f32[1,128], index: 3, kind: output, shape index: {0}]   ;;  %s397_s4 = inlined_call_operand.hbm [shape: f32[1,128], index: 4, kind: output, shape index: {1}]  }
   0x1   :  { %11 = vsyncpa [#allocation6], 0 }
   0x2   :  { %12 = vsyncpa [#allocation4], 0 }
   0x3   :  { %13 = vsyncpa [#allocation9], 0  ;;  %s294_s15 = smov [#allocation2]   ;;  %s295_s17 = smov [#allocation5]  }
   0x4   :  { %s20_s16 = sshll.u32 %s294_s15, 4  ;;  %s29_s18 = sshll.u32 %s295_s17, 4  ;;  %s21_s16 = int_to_ptr.vmem [resolvable:$true] %s20_s16  ;;  %s327_s18 = int_to_ptr.vmem [resolvable:$true] %s29_s18 }
   0x5   :  { %s198_s21 = scalar_lea.hbm %s393_s0, 128 }
   0x6   :  { %p199_p0 = scmp.ne.s32.totalorder %s393_s0, %s198_s21  ;;  %p202_p1 = scmp.lt.u32.totalorder %s198_s21, %s393_s0 }
   0x8   :  { %p204_p2 = pnand %p202_p1, %p199_p0 }
   0xa   :  { %207 = shalt.err (!%p204_p2)
}
   0xb   :  { %s208_s26 = scalar_lea.vmem %s21_s16, 128  ;;  %p213_p4 = scmp.lt.s32.totalorder %s21_s16, %s21_s16 }
   0xc   :  { %p209_p3 = scmp.ne.s32.totalorder %s21_s16, %s208_s26  ;;  %p214_p5 = scmp.lt.s32.totalorder %s208_s26, %s208_s26 }
   0xe   :  { %p215_p6 = por %p214_p5, %p213_p4 }
  0x10   :  { %p216_p7 = pnand %p215_p6, %p209_p3 }
  0x12   :  { %219 = shalt.err (!%p216_p7)
}
  0x13   :  { %23 = dma.hbm_to_vmem [thread:$0]  %s393_s0, 128, %s21_s16, [#allocation3]  }
  0x14   :  { %s220_s5 = scalar_lea.hbm %s394_s1, 256 }
  0x15   :  { %p221_p8 = scmp.ne.s32.totalorder %s394_s1, %s220_s5  ;;  %p224_p9 = scmp.lt.u32.totalorder %s220_s5, %s394_s1 }
  0x17   :  { %p226_p10 = pnand %p224_p9, %p221_p8 }
  0x19   :  { %229 = shalt.err (!%p226_p10)
}
  0x1a   :  { %s230_s10 = scalar_lea.vmem %s327_s18, 256  ;;  %p235_p12 = scmp.lt.s32.totalorder %s327_s18, %s327_s18 }
  0x1b   :  { %p231_p11 = scmp.ne.s32.totalorder %s327_s18, %s230_s10  ;;  %p236_p13 = scmp.lt.s32.totalorder %s230_s10, %s230_s10 }
  0x1d   :  { %p237_p0 = por %p236_p13, %p235_p12 }
  0x1f   :  { %p238_p1 = pnand %p237_p0, %p231_p11 }
  0x21   :  { %241 = shalt.err (!%p238_p1)
}
  0x22   :  { %s296_s0 = smov 64   ;;  %s297_s11 = smov 4  }
  0x23   :  { %35 = dma.hbm_to_vmem [thread:$0]  %s394_s1, 256, %s327_s18, [#allocation6], %s296_s0, %s296_s0, %s297_s11  }
  0x24   :  { %286 = dma.done.wait [#allocation3], 128  }
  0x25   :  { %287 = vsyncadd [#allocation3], 4294967168 }
  0x26   :  { %288 = dma.done.wait [#allocation6], 256  }
  0x27   :  { %289 = vsyncadd [#allocation6], 4294967040  ;;  %v298_v0 = vmov 0.0   ;;  %vm299_vm0 = vmmov 0   ;;  %v196_v1 = vld [vmem:[#allocation5] sm:$0xff]   ;;  %v197_v2 = vld [vmem:[#allocation5 + $0x8] sm:$0xff]  }
  0x28   :  { %180 = vmatprep.subr.bf16.mxu0 %v298_v0  ;;  %184 = vmatprep.mubr.msk.bf16.mxu0 %vm299_vm0, %v298_v0  ;;  %v45_v3 = vld [vmem:[#allocation2] sm:$0xff]  ;;  %vm70_vm1 = vcmask 261120   ;;  %s300_s1 = smov [#allocation7]   ;;  %s301_s17 = smov [#allocation8]  }
  0x29   :  { %181 = vmatpush3.bf16.msra.mxu0 %v196_v1  ;;  %v46_v4 = vpack.c.bf16 %v45_v3, %v45_v3  ;;  %v173_v5 = vld [vmem:[%s395_s2] ss:$0 sm:$0xff]  ;;  %s149_s16 = sshll.u32 %s300_s1, 4  ;;  %s159_s18 = sshll.u32 %s301_s17, 4  ;;  %s150_s16 = int_to_ptr.vmem [resolvable:$true] %s149_s16  ;;  %s361_s18 = int_to_ptr.vmem [resolvable:$true] %s159_s18 }
  0x2a   :  { %182 = vmatprep.subr.bf16.mxu0 %v298_v0  ;;  %s242_s2 = scalar_lea.vmem %s150_s16, 16  ;;  %s246_s19 = scalar_lea.vmem %s150_s16, 32 }
  0x2b   :  { %p243_p2 = scmp.ne.s32.totalorder %s150_s16, %s242_s2  ;;  %p247_p3 = scmp.lt.s32.totalorder %s150_s16, %s150_s16 }
  0x2c   :  { %p248_p4 = scmp.lt.s32.totalorder %s246_s19, %s242_s2 }
  0x2d   :  { %183 = vmatpush3.bf16.msra.mxu0 %v197_v2 }
  0x2e   :  { %p249_p5 = por %p248_p4, %p247_p3 }
  0x30   :  { %185 = vmatmul.mubr.msk.bf16.vlgmr.msra.gmra.mrb[0].mxu0 %vm70_vm1, %v46_v4  ;;  %p250_p6 = pnand %p249_p5, %p243_p2 }
 0x103   :  { %v108_v6 = vpop.f32.mrb[0].mxu0 }
 0x104   :  { %v109_v7 = vadd.f32 %v173_v5, %v108_v6  ;;  %v186_v8 = vpop.f32.mrb[1].mxu0 }
 0x105   :  { %v111_v9 = vpop.f32.mrb[2].mxu0 }
 0x106   :  { %v114_v10 = vrot.slane %v109_v7, 4  ;;  %v120_v11 = vmul.f32 %v109_v7, %v109_v7  ;;  %v187_v12 = vpop.f32.mrb[3].mxu0 }
 0x108   :  { %v115_v13 = vadd.f32 %v114_v10, %v109_v7  ;;  %v121_v14 = vrot.slane %v120_v11, 4 }
 0x10a   :  { %v116_v15 = vrot.slane %v115_v13, 2  ;;  %v122_v16 = vadd.f32 %v121_v14, %v120_v11 }
 0x10c   :  { %v117_v17 = vadd.f32 %v116_v15, %v115_v13  ;;  %v123_v18 = vrot.slane %v122_v16, 2 }
 0x10e   :  { %v118_v19 = vrot.slane %v117_v17, 1  ;;  %v124_v20 = vadd.f32 %v123_v18, %v122_v16 }
 0x110   :  { %v119_v21 = vadd.f32 %v118_v19, %v117_v17  ;;  %v125_v22 = vrot.slane %v124_v20, 1 }
 0x112   :  { %131 = vst [vmem:[#allocation7] sm:$0x1] %v119_v21  ;;  %v126_v23 = vadd.f32 %v125_v22, %v124_v20 }
 0x113   :  { %253 = shalt.err (!%p250_p6)
}
 0x114   :  { %s254_s22 = scalar_lea.hbm %s396_s3, 16 }
 0x115   :  { %p255_p7 = scmp.ne.s32.totalorder %s396_s3, %s254_s22  ;;  %p258_p8 = scmp.lt.u32.totalorder %s254_s22, %s396_s3 }
 0x117   :  { %p260_p9 = pnand %p258_p8, %p255_p7 }
 0x119   :  { %263 = shalt.err (!%p260_p9)
}
 0x11a   :  { %152 = dma.vmem_to_hbm [thread:$0]  %s150_s16, 16, %s396_s3, [#allocation4]   ;;  %132 = vst [vmem:[#allocation8] sm:$0x1] %v126_v23 }
 0x11b   :  { %s264_s29 = scalar_lea.vmem %s361_s18, 16  ;;  %s268_s30 = scalar_lea.vmem %s361_s18, 32 }
 0x11c   :  { %p265_p10 = scmp.ne.s32.totalorder %s361_s18, %s264_s29  ;;  %p269_p11 = scmp.lt.s32.totalorder %s361_s18, %s361_s18 }
 0x11d   :  { %p270_p12 = scmp.lt.s32.totalorder %s268_s30, %s264_s29 }
 0x11f   :  { %p271_p13 = por %p270_p12, %p269_p11 }
 0x121   :  { %p272_p0 = pnand %p271_p13, %p265_p10 }
 0x123   :  { %275 = shalt.err (!%p272_p0)
}
 0x124   :  { %s276_s7 = scalar_lea.hbm %s397_s4, 16 }
 0x125   :  { %p277_p1 = scmp.ne.s32.totalorder %s397_s4, %s276_s7  ;;  %p280_p2 = scmp.lt.u32.totalorder %s276_s7, %s397_s4 }
 0x127   :  { %p282_p3 = pnand %p280_p2, %p277_p1 }
 0x129   :  { %285 = shalt.err (!%p282_p3)
}
 0x12a   :  { %162 = dma.vmem_to_hbm [thread:$0]  %s361_s18, 16, %s397_s4, [#allocation9]  }
 0x12b   :  { %290 = dma.done.wait [#allocation4], 16  }
 0x12c   :  { %291 = vsyncadd [#allocation4], 4294967280 }
 0x12d   :  { %292 = dma.done.wait [#allocation9], 16  }
 0x12e   :  { %293 = vsyncadd [#allocation9], 4294967280 }
 0x12f   :  { %169 = vsyncpa [#allocation3], 1 }
 0x130   :  { %170 = vsyncpa [#allocation6], 1 }
 0x131   :  { %171 = vsyncpa [#allocation4], 1 }
 0x132   :  { %172 = vsyncpa [#allocation9], 1 }

</bundles_post_ra>
